<compile_context>
chip_gen: v6e
topology: v6e:2x2x1
jax: 0.10.0
libtpu: 0.0.40
codegen_flags: <defaults>
</compile_context>

<pallas_src>
import functools

import jax
import jax.numpy as jnp
from jax import lax
from jax.experimental import pallas as pl
from jax.experimental.pallas import tpu as pltpu


def cross_attention_kernel(num_heads, bps, sq, sk, da, dv, hidden,
                           audio_ref, video_ref, w_ref, out_ref):
    """One grid step handles `bps` batch elements folded into the sublane dim."""
    f32 = jnp.float32
    hd = hidden // num_heads
    r1 = da                      # packed-weight row offsets (8-aligned here)
    r2 = da + dv
    r3 = r2 + hidden

    a = audio_ref[0]                         # (bps*sq, da)
    v = video_ref[0]                         # (bps*sk, dv)

    wq = w_ref[0:r1, :]                      # (da, 2H)  cols [0:H] valid (scale folded)
    wkv = w_ref[r1:r2, :]                    # (dv, 2H)  [0:H]=k-proj, [H:2H]=v-proj
    wo = w_ref[r2:r3, :]                     # (H, 2H)   cols [0:H] valid
    biases = w_ref[r3:r3 + 2, :]             # (2, 2H)   row0=bq, row1=bo (zero-padded)

    # All-head projections: two MXU matmuls total (instead of 3*num_heads tiny
    # per-head matmuls).  Cols >= H of q_all are zeros and never read.
    q_all = jnp.dot(a, wq, preferred_element_type=f32) + biases[0:1, :]   # (bps*sq, 2H)
    kv_all = jnp.dot(v, wkv, preferred_element_type=f32)                  # (bps*sk, 2H)
    bo = biases[1:2, 0:hidden]                                            # (1, H)

    for b in range(bps):                     # static unroll, bps is tiny
        qb = q_all[b * sq:(b + 1) * sq, :]
        kb = kv_all[b * sk:(b + 1) * sk, 0:hidden]
        vb = kv_all[b * sk:(b + 1) * sk, hidden:2 * hidden]
        heads = []
        # TODO(synk): switch to lax.fori_loop(..., unroll=True) + VMEM scratch
        # accumulation if num_heads grows past ~8 (vreg pressure / spills).
        for h in range(num_heads):
            qh = qb[:, h * hd:(h + 1) * hd]
            kh = kb[:, h * hd:(h + 1) * hd]
            vh = vb[:, h * hd:(h + 1) * hd]
            # Scores: contract the head dim of both operands (no transpose).
            s = lax.dot_general(qh, kh, (((1,), (1,)), ((), ())),
                                preferred_element_type=f32)               # (sq, sk)
            s = s - jnp.max(s, axis=-1, keepdims=True)
            p = jnp.exp(s)
            p = p * pl.reciprocal(jnp.sum(p, axis=-1, keepdims=True), approx=True)
            heads.append(jnp.dot(p, vh, preferred_element_type=f32))      # (sq, hd)
        # Head concat is cheap lane placement; one output-projection matmul.
        o_cat = jnp.concatenate(heads, axis=-1)                           # (sq, H)
        row = jnp.dot(o_cat, wo, preferred_element_type=f32)[:, 0:hidden] + bo
        out_ref[0, pl.ds(b * sq, sq), :] = row.astype(out_ref.dtype)


def _prepare_params(params, num_heads):
    """Host/trace-time weight fusion, bias algebra, transposition and packing.

    Returns a single (Da + Dv + H + 2, 2H) f32 array laid out as:
      rows [0, Da)       : (audio_proj . q_proj).T, 1/sqrt(hd) folded, padded to 2H lanes
      rows [Da, Da+Dv)   : [(video_proj . k_proj).T | (video_proj . v_proj).T]
      rows [Da+Dv, +H)   : out_proj.T, padded to 2H lanes
      row  Da+Dv+H       : fused q bias (scale folded), padded
      row  Da+Dv+H+1     : fused output bias (bo + bv @ wo.T), padded
    """
    H = params["wa"].shape[0]
    hd = H // num_heads

    wa, ba = params["wa"], params["ba"].reshape(H)
    wvp, bvp = params["wv"], params["bv"].reshape(H)
    wqkv, bqkv = params["wqkv"], params["bqkv"].reshape(3 * H)
    wo, bo = params["wo"], params["bo"].reshape(H)

    wq_i, wk_i, wv_i = wqkv[:H], wqkv[H:2 * H], wqkv[2 * H:]
    bq_i, bv_i = bqkv[:H], bqkv[2 * H:]
    # bqkv[H:2H] (the k bias) is dropped: q . bk is constant across keys, so
    # the softmax output is exactly invariant to it.

    # Fuse audio/video Linear into the MHA in-projection, fold biases.
    wq_f = wq_i @ wa                       # (H, Da)
    bq_f = wq_i @ ba + bq_i                # (H,)
    wk_f = wk_i @ wvp                      # (H, Dv)
    wv_f = wv_i @ wvp                      # (H, Dv)
    bv_f = wv_i @ bvp + bv_i               # (H,)

    # Fold the 1/sqrt(head_dim) attention scale into the q projection.
    scale = 1.0 / jnp.sqrt(jnp.asarray(hd, jnp.float32))
    wq_f = wq_f * scale
    bq_f = bq_f * scale

    # Softmax rows sum to 1, so the v bias contributes exactly bv_f @ wo.T to
    # every output row -> fold it into the output bias.  (With the in-kernel
    # approx reciprocal the row sum is 1 +- ~2^-12, so the residual error of
    # this fold is ~|bv|*2^-12 -- far below the test tolerance.)
    bo_f = bo + bv_f @ wo.T                # (H,)

    H2 = 2 * H

    def pad_lanes(x):
        return jnp.pad(x, ((0, 0), (0, H2 - x.shape[1])))

    w_packed = jnp.concatenate(
        [
            pad_lanes(wq_f.T),                              # (Da, 2H)
            jnp.concatenate([wk_f.T, wv_f.T], axis=1),      # (Dv, 2H)
            pad_lanes(wo.T),                                # (H, 2H)
            jnp.stack([jnp.pad(bq_f, (0, H)),
                       jnp.pad(bo_f, (0, H))], axis=0),     # (2, 2H)
        ],
        axis=0,
    ).astype(jnp.float32)
    return w_packed


def _tensorcores_per_device():
    """TensorCores addressable by one JAX device (1 on v5e/v6e, 2 on v7x).

    Falls back to 1 (always correct, just one serial grid step) if the runtime
    does not expose a core count."""
    try:
        info = pltpu.get_tpu_info()
        for name in ("num_cores", "num_tensorcores", "tensorcore_count",
                     "core_count"):
            n = getattr(info, name, None)
            if n:
                return max(int(n), 1)
    except Exception:
        pass
    try:
        n = getattr(jax.devices()[0], "num_cores", None)
        if n:
            return max(int(n), 1)
    except Exception:
        pass
    return 1


@functools.partial(jax.jit, static_argnames=("num_heads",))
def cross_attention(audio, video, params, num_heads):
    B, Sq, Da = audio.shape
    _, Sk, Dv = video.shape
    H = params["wa"].shape[0]

    w_packed = _prepare_params(params, num_heads)

    # One grid step per TensorCore (1 on v5e/v6e, 2 on v7x); the batch is
    # folded into the sublane dim of each step.  Non-divisible batches are
    # zero-padded (sliced off below) instead of falling back to a per-batch
    # serial grid.
    G = _tensorcores_per_device()
    Bp = -(-B // G) * G
    if Bp != B:
        audio = jnp.concatenate(
            [audio, jnp.zeros((Bp - B, Sq, Da), audio.dtype)], axis=0)
        video = jnp.concatenate(
            [video, jnp.zeros((Bp - B, Sk, Dv), video.dtype)], axis=0)
    BPS = Bp // G

    audio3 = audio.reshape(G, BPS * Sq, Da)
    video3 = video.reshape(G, BPS * Sk, Dv)

    kernel = functools.partial(cross_attention_kernel,
                               num_heads, BPS, Sq, Sk, Da, Dv, H)

    out = pl.pallas_call(
        kernel,
        grid=(G,),
        in_specs=[
            pl.BlockSpec((1, BPS * Sq, Da), lambda i: (i, 0, 0)),
            pl.BlockSpec((1, BPS * Sk, Dv), lambda i: (i, 0, 0)),
            pl.BlockSpec(w_packed.shape, lambda i: (0, 0)),
        ],
        out_specs=pl.BlockSpec((1, BPS * Sq, H), lambda i: (i, 0, 0)),
        out_shape=jax.ShapeDtypeStruct((G, BPS * Sq, H), audio.dtype),
        compiler_params=pltpu.CompilerParams(
            dimension_semantics=("parallel",)),
    )(audio3, video3, w_packed)
    return out.reshape(Bp, Sq, H)[:B]


def reference(audio, video, params, num_heads):
    """Pure-JAX mirror of the PyTorch forward, for verification."""
    H = params["wa"].shape[0]
    hd = H // num_heads
    ap = audio @ params["wa"].T + params["ba"][0]
    vp = video @ params["wv"].T + params["bv"][0]
    wqkv, bqkv = params["wqkv"], params["bqkv"][0]
    q = ap @ wqkv[:H].T + bqkv[:H]
    k = vp @ wqkv[H:2 * H].T + bqkv[H:2 * H]
    v = vp @ wqkv[2 * H:].T + bqkv[2 * H:]
    B, Sq, _ = q.shape
    Sk = k.shape[1]
    qh = q.reshape(B, Sq, num_heads, hd).transpose(0, 2, 1, 3)
    kh = k.reshape(B, Sk, num_heads, hd).transpose(0, 2, 1, 3)
    vh = v.reshape(B, Sk, num_heads, hd).transpose(0, 2, 1, 3)
    s = jnp.einsum("bhqd,bhkd->bhqk", qh, kh) / jnp.sqrt(jnp.float32(hd))
    p = jax.nn.softmax(s, axis=-1)
    o = jnp.einsum("bhqk,bhkd->bhqd", p, vh).transpose(0, 2, 1, 3).reshape(B, Sq, H)
    return o @ params["wo"].T + params["bo"][0]


if __name__ == "__main__":
    # Small shapes consistent with the module
    B, Sq, Sk = 2, 8, 8
    audio_dim, video_dim, hidden_dim, num_heads = 32, 48, 32, 4

    key = jax.random.PRNGKey(0)
    ks = jax.random.split(key, 12)

    params = {
        "wa":   0.05 * jax.random.normal(ks[0], (hidden_dim, audio_dim), jnp.float32),
        "ba":   0.05 * jax.random.normal(ks[1], (1, hidden_dim), jnp.float32),
        "wv":   0.05 * jax.random.normal(ks[2], (hidden_dim, video_dim), jnp.float32),
        "bv":   0.05 * jax.random.normal(ks[3], (1, hidden_dim), jnp.float32),
        "wqkv": 0.05 * jax.random.normal(ks[4], (3 * hidden_dim, hidden_dim), jnp.float32),
        "bqkv": 0.05 * jax.random.normal(ks[5], (1, 3 * hidden_dim), jnp.float32),
        "wo":   0.05 * jax.random.normal(ks[6], (hidden_dim, hidden_dim), jnp.float32),
        "bo":   0.05 * jax.random.normal(ks[7], (1, hidden_dim), jnp.float32),
    }

    audio = jax.random.normal(ks[8], (B, Sq, audio_dim), jnp.float32)
    video = jax.random.normal(ks[9], (B, Sk, video_dim), jnp.float32)

    out = cross_attention(audio, video, params, num_heads=num_heads)
    out = jax.block_until_ready(out)

    ref = reference(audio, video, params, num_heads)
    assert out.shape == (B, Sq, hidden_dim)
    # 2e-3 tolerance covers the approx-reciprocal softmax, the bv-into-bo fold
    # (error ~|bv|*2^-12) and host-side weight-fusion reassociation; real bugs
    # would be orders of magnitude worse.
    assert jnp.max(jnp.abs(out - ref)) < 2e-3

    print("KERNEL_OK")
</pallas_src>

<mosaic_0001>
module attributes {stable_mosaic.version = 11 : i64} {
  func.func @cross_attention_kernel(%arg0: i32, %arg1: memref<1x16x32xf32, #tpu.memory_space<vmem>>, %arg2: memref<1x16x48xf32, #tpu.memory_space<vmem>>, %arg3: memref<114x64xf32, #tpu.memory_space<vmem>>, %arg4: memref<1x16x32xf32, #tpu.memory_space<vmem>>) attributes {dimension_semantics = [#tpu.dimension_semantics<parallel>], iteration_bounds = array<i64: 1>, scalar_prefetch = 0 : i64, scratch_operands = 0 : i64, tpu.core_type = #tpu.core_type<tc>, window_params = [{transform_indices = @transform_0, window_bounds = array<i64: 1, 16, 32>}, {transform_indices = @transform_1, window_bounds = array<i64: 1, 16, 48>}, {pipeline_mode = #tpu.pipeline_mode<synchronous>, transform_indices = @transform_2, window_bounds = array<i64: 114, 64>}, {transform_indices = @transform_3, window_bounds = array<i64: 1, 16, 32>}]} {
    %c0 = arith.constant 0 : index
    %c0_0 = arith.constant 0 : index
    %c0_1 = arith.constant 0 : index
    %0 = vector.load %arg1[%c0, %c0_0, %c0_1] : memref<1x16x32xf32, #tpu.memory_space<vmem>>, vector<1x16x32xf32>
    %1 = vector.shape_cast %0 : vector<1x16x32xf32> to vector<16x32xf32>
    %c0_2 = arith.constant 0 : index
    %c0_3 = arith.constant 0 : index
    %c0_4 = arith.constant 0 : index
    %2 = vector.load %arg2[%c0_2, %c0_3, %c0_4] : memref<1x16x48xf32, #tpu.memory_space<vmem>>, vector<1x16x48xf32>
    %3 = vector.shape_cast %2 : vector<1x16x48xf32> to vector<16x48xf32>
    %c0_5 = arith.constant 0 : index
    %c0_6 = arith.constant 0 : index
    %4 = vector.load %arg3[%c0_5, %c0_6] : memref<114x64xf32, #tpu.memory_space<vmem>>, vector<32x64xf32>
    %c32 = arith.constant 32 : index
    %c0_7 = arith.constant 0 : index
    %5 = vector.load %arg3[%c32, %c0_7] : memref<114x64xf32, #tpu.memory_space<vmem>>, vector<48x64xf32>
    %c80 = arith.constant 80 : index
    %c0_8 = arith.constant 0 : index
    %6 = vector.load %arg3[%c80, %c0_8] : memref<114x64xf32, #tpu.memory_space<vmem>>, vector<32x64xf32>
    %c112 = arith.constant 112 : index
    %c0_9 = arith.constant 0 : index
    %7 = vector.load %arg3[%c112, %c0_9] : memref<114x64xf32, #tpu.memory_space<vmem>>, vector<2x64xf32>
    %cst = arith.constant dense<0.000000e+00> : vector<16x64xf32>
    %8 = tpu.matmul %1, %4, %cst {dimension_numbers = #tpu.dot_dimension_numbers<[1], [0], [0], [1], [0, 0, 1, 1], [], []>} : vector<16x32xf32>, vector<32x64xf32>, vector<16x64xf32> -> vector<16x64xf32>
    %9 = vector.extract_strided_slice %7 {offsets = [0, 0], sizes = [1, 64], strides = [1, 1]} : vector<2x64xf32> to vector<1x64xf32>
    %10 = vector.broadcast %9 : vector<1x64xf32> to vector<16x64xf32>
    %11 = arith.addf %8, %10 : vector<16x64xf32>
    %cst_10 = arith.constant dense<0.000000e+00> : vector<16x64xf32>
    %12 = tpu.matmul %3, %5, %cst_10 {dimension_numbers = #tpu.dot_dimension_numbers<[1], [0], [0], [1], [0, 0, 1, 1], [], []>} : vector<16x48xf32>, vector<48x64xf32>, vector<16x64xf32> -> vector<16x64xf32>
    %13 = vector.extract_strided_slice %7 {offsets = [1, 0], sizes = [1, 32], strides = [1, 1]} : vector<2x64xf32> to vector<1x32xf32>
    %14 = vector.extract_strided_slice %11 {offsets = [0, 0], sizes = [8, 64], strides = [1, 1]} : vector<16x64xf32> to vector<8x64xf32>
    %15 = vector.extract_strided_slice %12 {offsets = [0, 0], sizes = [8, 32], strides = [1, 1]} : vector<16x64xf32> to vector<8x32xf32>
    %16 = vector.extract_strided_slice %12 {offsets = [0, 32], sizes = [8, 32], strides = [1, 1]} : vector<16x64xf32> to vector<8x32xf32>
    %17 = vector.extract_strided_slice %14 {offsets = [0, 0], sizes = [8, 8], strides = [1, 1]} : vector<8x64xf32> to vector<8x8xf32>
    %18 = vector.extract_strided_slice %15 {offsets = [0, 0], sizes = [8, 8], strides = [1, 1]} : vector<8x32xf32> to vector<8x8xf32>
    %19 = vector.extract_strided_slice %16 {offsets = [0, 0], sizes = [8, 8], strides = [1, 1]} : vector<8x32xf32> to vector<8x8xf32>
    %cst_11 = arith.constant dense<0.000000e+00> : vector<8x8xf32>
    %20 = tpu.matmul %17, %18, %cst_11 {dimension_numbers = #tpu.dot_dimension_numbers<[1], [1], [0], [0], [0, 0, 1, 0], [], []>} : vector<8x8xf32>, vector<8x8xf32>, vector<8x8xf32> -> vector<8x8xf32>
    %cst_12 = arith.constant dense<0xFF800000> : vector<8xf32>
    %21 = vector.multi_reduction <maximumf>, %20, %cst_12 [1] : vector<8x8xf32> to vector<8xf32>
    %22 = vector.shape_cast %21 : vector<8xf32> to vector<8x1xf32>
    %23 = vector.broadcast %22 : vector<8x1xf32> to vector<8x8xf32>
    %24 = arith.subf %20, %23 : vector<8x8xf32>
    %25 = math.exp %24 : vector<8x8xf32>
    %cst_13 = arith.constant dense<0.000000e+00> : vector<8xf32>
    %26 = vector.multi_reduction <add>, %25, %cst_13 [1] : vector<8x8xf32> to vector<8xf32>
    %27 = vector.shape_cast %26 : vector<8xf32> to vector<8x1xf32>
    %28 = tpu.reciprocal %27 {approx = true} : vector<8x1xf32> -> vector<8x1xf32>
    %29 = vector.broadcast %28 : vector<8x1xf32> to vector<8x8xf32>
    %30 = arith.mulf %25, %29 : vector<8x8xf32>
    %cst_14 = arith.constant dense<0.000000e+00> : vector<8x8xf32>
    %31 = tpu.matmul %30, %19, %cst_14 {dimension_numbers = #tpu.dot_dimension_numbers<[1], [0], [0], [1], [0, 0, 1, 1], [], []>} : vector<8x8xf32>, vector<8x8xf32>, vector<8x8xf32> -> vector<8x8xf32>
    %32 = vector.extract_strided_slice %14 {offsets = [0, 8], sizes = [8, 8], strides = [1, 1]} : vector<8x64xf32> to vector<8x8xf32>
    %33 = vector.extract_strided_slice %15 {offsets = [0, 8], sizes = [8, 8], strides = [1, 1]} : vector<8x32xf32> to vector<8x8xf32>
    %34 = vector.extract_strided_slice %16 {offsets = [0, 8], sizes = [8, 8], strides = [1, 1]} : vector<8x32xf32> to vector<8x8xf32>
    %cst_15 = arith.constant dense<0.000000e+00> : vector<8x8xf32>
    %35 = tpu.matmul %32, %33, %cst_15 {dimension_numbers = #tpu.dot_dimension_numbers<[1], [1], [0], [0], [0, 0, 1, 0], [], []>} : vector<8x8xf32>, vector<8x8xf32>, vector<8x8xf32> -> vector<8x8xf32>
    %cst_16 = arith.constant dense<0xFF800000> : vector<8xf32>
    %36 = vector.multi_reduction <maximumf>, %35, %cst_16 [1] : vector<8x8xf32> to vector<8xf32>
    %37 = vector.shape_cast %36 : vector<8xf32> to vector<8x1xf32>
    %38 = vector.broadcast %37 : vector<8x1xf32> to vector<8x8xf32>
    %39 = arith.subf %35, %38 : vector<8x8xf32>
    %40 = math.exp %39 : vector<8x8xf32>
    %cst_17 = arith.constant dense<0.000000e+00> : vector<8xf32>
    %41 = vector.multi_reduction <add>, %40, %cst_17 [1] : vector<8x8xf32> to vector<8xf32>
    %42 = vector.shape_cast %41 : vector<8xf32> to vector<8x1xf32>
    %43 = tpu.reciprocal %42 {approx = true} : vector<8x1xf32> -> vector<8x1xf32>
    %44 = vector.broadcast %43 : vector<8x1xf32> to vector<8x8xf32>
    %45 = arith.mulf %40, %44 : vector<8x8xf32>
    %cst_18 = arith.constant dense<0.000000e+00> : vector<8x8xf32>
    %46 = tpu.matmul %45, %34, %cst_18 {dimension_numbers = #tpu.dot_dimension_numbers<[1], [0], [0], [1], [0, 0, 1, 1], [], []>} : vector<8x8xf32>, vector<8x8xf32>, vector<8x8xf32> -> vector<8x8xf32>
    %47 = vector.extract_strided_slice %14 {offsets = [0, 16], sizes = [8, 8], strides = [1, 1]} : vector<8x64xf32> to vector<8x8xf32>
    %48 = vector.extract_strided_slice %15 {offsets = [0, 16], sizes = [8, 8], strides = [1, 1]} : vector<8x32xf32> to vector<8x8xf32>
    %49 = vector.extract_strided_slice %16 {offsets = [0, 16], sizes = [8, 8], strides = [1, 1]} : vector<8x32xf32> to vector<8x8xf32>
    %cst_19 = arith.constant dense<0.000000e+00> : vector<8x8xf32>
    %50 = tpu.matmul %47, %48, %cst_19 {dimension_numbers = #tpu.dot_dimension_numbers<[1], [1], [0], [0], [0, 0, 1, 0], [], []>} : vector<8x8xf32>, vector<8x8xf32>, vector<8x8xf32> -> vector<8x8xf32>
    %cst_20 = arith.constant dense<0xFF800000> : vector<8xf32>
    %51 = vector.multi_reduction <maximumf>, %50, %cst_20 [1] : vector<8x8xf32> to vector<8xf32>
    %52 = vector.shape_cast %51 : vector<8xf32> to vector<8x1xf32>
    %53 = vector.broadcast %52 : vector<8x1xf32> to vector<8x8xf32>
    %54 = arith.subf %50, %53 : vector<8x8xf32>
    %55 = math.exp %54 : vector<8x8xf32>
    %cst_21 = arith.constant dense<0.000000e+00> : vector<8xf32>
    %56 = vector.multi_reduction <add>, %55, %cst_21 [1] : vector<8x8xf32> to vector<8xf32>
    %57 = vector.shape_cast %56 : vector<8xf32> to vector<8x1xf32>
    %58 = tpu.reciprocal %57 {approx = true} : vector<8x1xf32> -> vector<8x1xf32>
    %59 = vector.broadcast %58 : vector<8x1xf32> to vector<8x8xf32>
    %60 = arith.mulf %55, %59 : vector<8x8xf32>
    %cst_22 = arith.constant dense<0.000000e+00> : vector<8x8xf32>
    %61 = tpu.matmul %60, %49, %cst_22 {dimension_numbers = #tpu.dot_dimension_numbers<[1], [0], [0], [1], [0, 0, 1, 1], [], []>} : vector<8x8xf32>, vector<8x8xf32>, vector<8x8xf32> -> vector<8x8xf32>
    %62 = vector.extract_strided_slice %14 {offsets = [0, 24], sizes = [8, 8], strides = [1, 1]} : vector<8x64xf32> to vector<8x8xf32>
    %63 = vector.extract_strided_slice %15 {offsets = [0, 24], sizes = [8, 8], strides = [1, 1]} : vector<8x32xf32> to vector<8x8xf32>
    %64 = vector.extract_strided_slice %16 {offsets = [0, 24], sizes = [8, 8], strides = [1, 1]} : vector<8x32xf32> to vector<8x8xf32>
    %cst_23 = arith.constant dense<0.000000e+00> : vector<8x8xf32>
    %65 = tpu.matmul %62, %63, %cst_23 {dimension_numbers = #tpu.dot_dimension_numbers<[1], [1], [0], [0], [0, 0, 1, 0], [], []>} : vector<8x8xf32>, vector<8x8xf32>, vector<8x8xf32> -> vector<8x8xf32>
    %cst_24 = arith.constant dense<0xFF800000> : vector<8xf32>
    %66 = vector.multi_reduction <maximumf>, %65, %cst_24 [1] : vector<8x8xf32> to vector<8xf32>
    %67 = vector.shape_cast %66 : vector<8xf32> to vector<8x1xf32>
    %68 = vector.broadcast %67 : vector<8x1xf32> to vector<8x8xf32>
    %69 = arith.subf %65, %68 : vector<8x8xf32>
    %70 = math.exp %69 : vector<8x8xf32>
    %cst_25 = arith.constant dense<0.000000e+00> : vector<8xf32>
    %71 = vector.multi_reduction <add>, %70, %cst_25 [1] : vector<8x8xf32> to vector<8xf32>
    %72 = vector.shape_cast %71 : vector<8xf32> to vector<8x1xf32>
    %73 = tpu.reciprocal %72 {approx = true} : vector<8x1xf32> -> vector<8x1xf32>
    %74 = vector.broadcast %73 : vector<8x1xf32> to vector<8x8xf32>
    %75 = arith.mulf %70, %74 : vector<8x8xf32>
    %cst_26 = arith.constant dense<0.000000e+00> : vector<8x8xf32>
    %76 = tpu.matmul %75, %64, %cst_26 {dimension_numbers = #tpu.dot_dimension_numbers<[1], [0], [0], [1], [0, 0, 1, 1], [], []>} : vector<8x8xf32>, vector<8x8xf32>, vector<8x8xf32> -> vector<8x8xf32>
    %77 = tpu.concatenate %31, %46, %61, %76 in 1 : vector<8x8xf32>, vector<8x8xf32>, vector<8x8xf32>, vector<8x8xf32> -> vector<8x32xf32>
    %cst_27 = arith.constant dense<0.000000e+00> : vector<8x64xf32>
    %78 = tpu.matmul %77, %6, %cst_27 {dimension_numbers = #tpu.dot_dimension_numbers<[1], [0], [0], [1], [0, 0, 1, 1], [], []>} : vector<8x32xf32>, vector<32x64xf32>, vector<8x64xf32> -> vector<8x64xf32>
    %79 = vector.extract_strided_slice %78 {offsets = [0, 0], sizes = [8, 32], strides = [1, 1]} : vector<8x64xf32> to vector<8x32xf32>
    %80 = vector.broadcast %13 : vector<1x32xf32> to vector<8x32xf32>
    %81 = arith.addf %79, %80 : vector<8x32xf32>
    %c0_28 = arith.constant 0 : index
    %c0_29 = arith.constant 0 : index
    %c0_30 = arith.constant 0 : index
    %82 = vector.load %arg4[%c0_28, %c0_29, %c0_30] : memref<1x16x32xf32, #tpu.memory_space<vmem>>, vector<1x8x32xf32>
    %83 = vector.shape_cast %82 : vector<1x8x32xf32> to vector<8x32xf32>
    %84 = vector.shape_cast %81 : vector<8x32xf32> to vector<1x8x32xf32>
    tpu.vector_store %arg4[%c0_28, %c0_29, %c0_30], %84 {strides = array<i32>} : memref<1x16x32xf32, #tpu.memory_space<vmem>>, vector<1x8x32xf32>,
    %85 = vector.extract_strided_slice %11 {offsets = [8, 0], sizes = [8, 64], strides = [1, 1]} : vector<16x64xf32> to vector<8x64xf32>
    %86 = vector.extract_strided_slice %12 {offsets = [8, 0], sizes = [8, 32], strides = [1, 1]} : vector<16x64xf32> to vector<8x32xf32>
    %87 = vector.extract_strided_slice %12 {offsets = [8, 32], sizes = [8, 32], strides = [1, 1]} : vector<16x64xf32> to vector<8x32xf32>
    %88 = vector.extract_strided_slice %85 {offsets = [0, 0], sizes = [8, 8], strides = [1, 1]} : vector<8x64xf32> to vector<8x8xf32>
    %89 = vector.extract_strided_slice %86 {offsets = [0, 0], sizes = [8, 8], strides = [1, 1]} : vector<8x32xf32> to vector<8x8xf32>
    %90 = vector.extract_strided_slice %87 {offsets = [0, 0], sizes = [8, 8], strides = [1, 1]} : vector<8x32xf32> to vector<8x8xf32>
    %cst_31 = arith.constant dense<0.000000e+00> : vector<8x8xf32>
    %91 = tpu.matmul %88, %89, %cst_31 {dimension_numbers = #tpu.dot_dimension_numbers<[1], [1], [0], [0], [0, 0, 1, 0], [], []>} : vector<8x8xf32>, vector<8x8xf32>, vector<8x8xf32> -> vector<8x8xf32>
    %cst_32 = arith.constant dense<0xFF800000> : vector<8xf32>
    %92 = vector.multi_reduction <maximumf>, %91, %cst_32 [1] : vector<8x8xf32> to vector<8xf32>
    %93 = vector.shape_cast %92 : vector<8xf32> to vector<8x1xf32>
    %94 = vector.broadcast %93 : vector<8x1xf32> to vector<8x8xf32>
    %95 = arith.subf %91, %94 : vector<8x8xf32>
    %96 = math.exp %95 : vector<8x8xf32>
    %cst_33 = arith.constant dense<0.000000e+00> : vector<8xf32>
    %97 = vector.multi_reduction <add>, %96, %cst_33 [1] : vector<8x8xf32> to vector<8xf32>
    %98 = vector.shape_cast %97 : vector<8xf32> to vector<8x1xf32>
    %99 = tpu.reciprocal %98 {approx = true} : vector<8x1xf32> -> vector<8x1xf32>
    %100 = vector.broadcast %99 : vector<8x1xf32> to vector<8x8xf32>
    %101 = arith.mulf %96, %100 : vector<8x8xf32>
    %cst_34 = arith.constant dense<0.000000e+00> : vector<8x8xf32>
    %102 = tpu.matmul %101, %90, %cst_34 {dimension_numbers = #tpu.dot_dimension_numbers<[1], [0], [0], [1], [0, 0, 1, 1], [], []>} : vector<8x8xf32>, vector<8x8xf32>, vector<8x8xf32> -> vector<8x8xf32>
    %103 = vector.extract_strided_slice %85 {offsets = [0, 8], sizes = [8, 8], strides = [1, 1]} : vector<8x64xf32> to vector<8x8xf32>
    %104 = vector.extract_strided_slice %86 {offsets = [0, 8], sizes = [8, 8], strides = [1, 1]} : vector<8x32xf32> to vector<8x8xf32>
    %105 = vector.extract_strided_slice %87 {offsets = [0, 8], sizes = [8, 8], strides = [1, 1]} : vector<8x32xf32> to vector<8x8xf32>
    %cst_35 = arith.constant dense<0.000000e+00> : vector<8x8xf32>
    %106 = tpu.matmul %103, %104, %cst_35 {dimension_numbers = #tpu.dot_dimension_numbers<[1], [1], [0], [0], [0, 0, 1, 0], [], []>} : vector<8x8xf32>, vector<8x8xf32>, vector<8x8xf32> -> vector<8x8xf32>
    %cst_36 = arith.constant dense<0xFF800000> : vector<8xf32>
    %107 = vector.multi_reduction <maximumf>, %106, %cst_36 [1] : vector<8x8xf32> to vector<8xf32>
    %108 = vector.shape_cast %107 : vector<8xf32> to vector<8x1xf32>
    %109 = vector.broadcast %108 : vector<8x1xf32> to vector<8x8xf32>
    %110 = arith.subf %106, %109 : vector<8x8xf32>
    %111 = math.exp %110 : vector<8x8xf32>
    %cst_37 = arith.constant dense<0.000000e+00> : vector<8xf32>
    %112 = vector.multi_reduction <add>, %111, %cst_37 [1] : vector<8x8xf32> to vector<8xf32>
    %113 = vector.shape_cast %112 : vector<8xf32> to vector<8x1xf32>
    %114 = tpu.reciprocal %113 {approx = true} : vector<8x1xf32> -> vector<8x1xf32>
    %115 = vector.broadcast %114 : vector<8x1xf32> to vector<8x8xf32>
    %116 = arith.mulf %111, %115 : vector<8x8xf32>
    %cst_38 = arith.constant dense<0.000000e+00> : vector<8x8xf32>
    %117 = tpu.matmul %116, %105, %cst_38 {dimension_numbers = #tpu.dot_dimension_numbers<[1], [0], [0], [1], [0, 0, 1, 1], [], []>} : vector<8x8xf32>, vector<8x8xf32>, vector<8x8xf32> -> vector<8x8xf32>
    %118 = vector.extract_strided_slice %85 {offsets = [0, 16], sizes = [8, 8], strides = [1, 1]} : vector<8x64xf32> to vector<8x8xf32>
    %119 = vector.extract_strided_slice %86 {offsets = [0, 16], sizes = [8, 8], strides = [1, 1]} : vector<8x32xf32> to vector<8x8xf32>
    %120 = vector.extract_strided_slice %87 {offsets = [0, 16], sizes = [8, 8], strides = [1, 1]} : vector<8x32xf32> to vector<8x8xf32>
    %cst_39 = arith.constant dense<0.000000e+00> : vector<8x8xf32>
    %121 = tpu.matmul %118, %119, %cst_39 {dimension_numbers = #tpu.dot_dimension_numbers<[1], [1], [0], [0], [0, 0, 1, 0], [], []>} : vector<8x8xf32>, vector<8x8xf32>, vector<8x8xf32> -> vector<8x8xf32>
    %cst_40 = arith.constant dense<0xFF800000> : vector<8xf32>
    %122 = vector.multi_reduction <maximumf>, %121, %cst_40 [1] : vector<8x8xf32> to vector<8xf32>
    %123 = vector.shape_cast %122 : vector<8xf32> to vector<8x1xf32>
    %124 = vector.broadcast %123 : vector<8x1xf32> to vector<8x8xf32>
    %125 = arith.subf %121, %124 : vector<8x8xf32>
    %126 = math.exp %125 : vector<8x8xf32>
    %cst_41 = arith.constant dense<0.000000e+00> : vector<8xf32>
    %127 = vector.multi_reduction <add>, %126, %cst_41 [1] : vector<8x8xf32> to vector<8xf32>
    %128 = vector.shape_cast %127 : vector<8xf32> to vector<8x1xf32>
    %129 = tpu.reciprocal %128 {approx = true} : vector<8x1xf32> -> vector<8x1xf32>
    %130 = vector.broadcast %129 : vector<8x1xf32> to vector<8x8xf32>
    %131 = arith.mulf %126, %130 : vector<8x8xf32>
    %cst_42 = arith.constant dense<0.000000e+00> : vector<8x8xf32>
    %132 = tpu.matmul %131, %120, %cst_42 {dimension_numbers = #tpu.dot_dimension_numbers<[1], [0], [0], [1], [0, 0, 1, 1], [], []>} : vector<8x8xf32>, vector<8x8xf32>, vector<8x8xf32> -> vector<8x8xf32>
    %133 = vector.extract_strided_slice %85 {offsets = [0, 24], sizes = [8, 8], strides = [1, 1]} : vector<8x64xf32> to vector<8x8xf32>
    %134 = vector.extract_strided_slice %86 {offsets = [0, 24], sizes = [8, 8], strides = [1, 1]} : vector<8x32xf32> to vector<8x8xf32>
    %135 = vector.extract_strided_slice %87 {offsets = [0, 24], sizes = [8, 8], strides = [1, 1]} : vector<8x32xf32> to vector<8x8xf32>
    %cst_43 = arith.constant dense<0.000000e+00> : vector<8x8xf32>
    %136 = tpu.matmul %133, %134, %cst_43 {dimension_numbers = #tpu.dot_dimension_numbers<[1], [1], [0], [0], [0, 0, 1, 0], [], []>} : vector<8x8xf32>, vector<8x8xf32>, vector<8x8xf32> -> vector<8x8xf32>
    %cst_44 = arith.constant dense<0xFF800000> : vector<8xf32>
    %137 = vector.multi_reduction <maximumf>, %136, %cst_44 [1] : vector<8x8xf32> to vector<8xf32>
    %138 = vector.shape_cast %137 : vector<8xf32> to vector<8x1xf32>
    %139 = vector.broadcast %138 : vector<8x1xf32> to vector<8x8xf32>
    %140 = arith.subf %136, %139 : vector<8x8xf32>
    %141 = math.exp %140 : vector<8x8xf32>
    %cst_45 = arith.constant dense<0.000000e+00> : vector<8xf32>
    %142 = vector.multi_reduction <add>, %141, %cst_45 [1] : vector<8x8xf32> to vector<8xf32>
    %143 = vector.shape_cast %142 : vector<8xf32> to vector<8x1xf32>
    %144 = tpu.reciprocal %143 {approx = true} : vector<8x1xf32> -> vector<8x1xf32>
    %145 = vector.broadcast %144 : vector<8x1xf32> to vector<8x8xf32>
    %146 = arith.mulf %141, %145 : vector<8x8xf32>
    %cst_46 = arith.constant dense<0.000000e+00> : vector<8x8xf32>
    %147 = tpu.matmul %146, %135, %cst_46 {dimension_numbers = #tpu.dot_dimension_numbers<[1], [0], [0], [1], [0, 0, 1, 1], [], []>} : vector<8x8xf32>, vector<8x8xf32>, vector<8x8xf32> -> vector<8x8xf32>
    %148 = tpu.concatenate %102, %117, %132, %147 in 1 : vector<8x8xf32>, vector<8x8xf32>, vector<8x8xf32>, vector<8x8xf32> -> vector<8x32xf32>
    %cst_47 = arith.constant dense<0.000000e+00> : vector<8x64xf32>
    %149 = tpu.matmul %148, %6, %cst_47 {dimension_numbers = #tpu.dot_dimension_numbers<[1], [0], [0], [1], [0, 0, 1, 1], [], []>} : vector<8x32xf32>, vector<32x64xf32>, vector<8x64xf32> -> vector<8x64xf32>
    %150 = vector.extract_strided_slice %149 {offsets = [0, 0], sizes = [8, 32], strides = [1, 1]} : vector<8x64xf32> to vector<8x32xf32>
    %151 = vector.broadcast %13 : vector<1x32xf32> to vector<8x32xf32>
    %152 = arith.addf %150, %151 : vector<8x32xf32>
    %c0_48 = arith.constant 0 : index
    %c8 = arith.constant 8 : index
    %c0_49 = arith.constant 0 : index
    %153 = vector.load %arg4[%c0_48, %c8, %c0_49] : memref<1x16x32xf32, #tpu.memory_space<vmem>>, vector<1x8x32xf32>
    %154 = vector.shape_cast %153 : vector<1x8x32xf32> to vector<8x32xf32>
    %155 = vector.shape_cast %152 : vector<8x32xf32> to vector<1x8x32xf32>
    tpu.vector_store %arg4[%c0_48, %c8, %c0_49], %155 {strides = array<i32>} : memref<1x16x32xf32, #tpu.memory_space<vmem>>, vector<1x8x32xf32>,
    return
  }
  func.func @transform_0(%arg0: i32) -> (i32, i32, i32) {
    %c0_i32 = arith.constant 0 : i32
    %c0_i32_0 = arith.constant 0 : i32
    %c0_i32_1 = arith.constant 0 : i32
    return %arg0, %c0_i32, %c0_i32_0 : i32, i32, i32
  }
  func.func @transform_1(%arg0: i32) -> (i32, i32, i32) {
    %c0_i32 = arith.constant 0 : i32
    %c0_i32_0 = arith.constant 0 : i32
    %c0_i32_1 = arith.constant 0 : i32
    return %arg0, %c0_i32, %c0_i32_0 : i32, i32, i32
  }
  func.func @transform_2(%arg0: i32) -> (i32, i32) {
    %c0_i32 = arith.constant 0 : i32
    %c0_i32_0 = arith.constant 0 : i32
    %c0_i32_1 = arith.constant 0 : i32
    return %c0_i32, %c0_i32_0 : i32, i32
  }
  func.func @transform_3(%arg0: i32) -> (i32, i32, i32) {
    %c0_i32 = arith.constant 0 : i32
    %c0_i32_0 = arith.constant 0 : i32
    %c0_i32_1 = arith.constant 0 : i32
    return %arg0, %c0_i32, %c0_i32_0 : i32, i32, i32
  }
}

</mosaic_0001>

<bundles_post_ra>
// kernel: cross_attention.1
= control target key start
LH: loop header
LB: loop body
LE: loop exit
PB: predicated region body
PF: predicated region fallthrough
CT: control target
= control target key end

     0   :  { %s2274_s0 = inlined_call_operand.vmem [shape: f32[1,16,32], index: 0, kind: input, shape index: {}]   ;;  %s2275_s1 = inlined_call_operand.vmem [shape: f32[1,16,48], index: 1, kind: input, shape index: {}]   ;;  %s2276_s2 = inlined_call_operand.vmem [shape: f32[114,64], index: 2, kind: input, shape index: {}]   ;;  %s2277_s3 = inlined_call_operand.hbm [shape: f32[1,16,32], index: 3, kind: output, shape index: {}]  }
   0x1   :  { %v28_v0 = vld [vmem:[%s2276_s2 + $0x48] sm:$0xff]  ;;  %v27_v1 = vld [vmem:[%s2276_s2 + $0x40] sm:$0xff]  ;;  %v22_v2 = vld [vmem:[%s2276_s2 + $0x18] sm:$0xff] }
   0x2   :  { %1818 = vmatprep.subr.mxu1 %v28_v0  ;;  %1807 = vmatprep.subr.mxu0 %v22_v2  ;;  %v21_v3 = vld [vmem:[%s2276_s2 + $0x10] sm:$0xff]  ;;  %v26_v4 = vld [vmem:[%s2276_s2 + $0x38] sm:$0xff]  ;;  %v20_v5 = vld [vmem:[%s2276_s2 + $0x8] sm:$0xff] }
   0x3   :  { %1819 = vmatpush3.msra.mxu1 %v28_v0  ;;  %1808 = vmatpush3.msra.mxu0 %v22_v2  ;;  %v25_v6 = vld [vmem:[%s2276_s2 + $0x30] sm:$0xff]  ;;  %v19_v7 = vld [vmem:[%s2276_s2] sm:$0xff] }
   0x4   :  { %1820 = vmatprep.subr.mxu1 %v27_v1  ;;  %1809 = vmatprep.subr.mxu0 %v21_v3 }
   0x5   :  { %1821 = vmatpush3.msra.mxu1 %v27_v1  ;;  %1810 = vmatpush3.msra.mxu0 %v21_v3 }
   0x6   :  { %1822 = vmatprep.subr.mxu1 %v26_v4  ;;  %1811 = vmatprep.subr.mxu0 %v20_v5 }
   0x7   :  { %8 = vsyncpa [#allocation3], 0  ;;  %1823 = vmatpush3.msra.mxu1 %v26_v4  ;;  %v24_v8 = vld [vmem:[%s2276_s2 + $0x28] sm:$0xff]  ;;  %1812 = vmatpush3.msra.mxu0 %v20_v5  ;;  %v15_v9 = vld [vmem:[%s2274_s0] sm:$0xff]  ;;  %vm38_vm0 = vcmask 261120   ;;  %vm120_vm1 = vcmask 392192   ;;  %v34_v15 = vlaneseq }
   0x8   :  { %1824 = vmatprep.subr.mxu1 %v25_v6  ;;  %1813 = vmatprep.subr.mxu0 %v19_v7  ;;  %v17_v10 = vld [vmem:[%s2275_s1] sm:$0xff]  ;;  %v16_v12 = vld [vmem:[%s2274_s0 + $0x8] sm:$0xff]  ;;  %v2003_v14 = vmov 0.0   ;;  %vm2004_vm2 = vmmov 0   ;;  %v2093_v18 = vld [vmem:[%s2276_s2 + $0x70] sm:$0x3] }
   0x9   :  { %1825 = vmatpush3.msra.mxu1 %v25_v6  ;;  %v23_v11 = vld [vmem:[%s2276_s2 + $0x20] sm:$0xff]  ;;  %1814 = vmatpush3.msra.mxu0 %v19_v7  ;;  %v18_v13 = vld [vmem:[%s2275_s1 + $0x8] sm:$0xff]  ;;  %v2087_v16 = vshrl.u32 %v34_v15, 7  ;;  %vm202_vm3 = vcmask 64512   ;;  %s2005_s13 = smov 112   ;;  %s2006_s14 = smov 120  }
   0xa   :  { %1826 = vmatprep.subr.mxu1 %v24_v8  ;;  %1815 = vmatprep.mubr.msk.f32.mxu0 %vm38_vm0, %v15_v9  ;;  %s2007_s15 = smov 104   ;;  %s2008_s16 = smov 96   ;;  %vm874_vm4 = vcmask 130048   ;;  %vm876_vm5 = vcmask 195584  }
   0xb   :  { %1827 = vmatpush3.msra.mxu1 %v24_v8  ;;  %1830 = vmatprep.mubr.msk.f32.mxu1 %vm120_vm1, %v17_v10  ;;  %v36_v17 = vsub.s32 0, %v2087_v16  ;;  %s2009_s17 = smov 80   ;;  %s2010_s18 = smov 72  }
   0xc   :  { %1828 = vmatprep.subr.mxu1 %v23_v11  ;;  %1816 = vmatmul.mubr.msk.f32.vlgmr.msra.gmra.mxu0 %vm38_vm0, %v16_v12  ;;  %s2011_s19 = smov 88   ;;  %s2012_s28 = smov 8  }
   0xd   :  { %1829 = vmatpush3.msra.mxu1 %v23_v11  ;;  %1833 = vmatprep.subr.mxu0 %v2003_v14  ;;  %v37_v19 = vrot.slane %v2093_v18, %v36_v17  ;;  %s2013_s29 = smov 16   ;;  %s2015_s30 = smov [#allocation2]  }
   0xe   :  { %1831 = vmatmul.mubr.msk.f32.vlgmr.msra.gmra.mxu1 %vm120_vm1, %v18_v13  ;;  %1843 = vmatprep.subr.mxu1 %v2003_v14  ;;  %s1710_s4 = sshll.u32 %s2015_s30, 4  ;;  %s1711_s4 = int_to_ptr.vmem [resolvable:$true] %s1710_s4 }
   0xf   :  { %1835 = vmatprep.mubr.msk.f32.mxu0 %vm2004_vm2, %v2003_v14  ;;  %1845 = vmatprep.mubr.msk.f32.mxu1 %vm2004_vm2, %v2003_v14  ;;  %s1981_s5 = scalar_lea.vmem %s1711_s4, 256  ;;  %p1986_p1 = scmp.lt.s32.totalorder %s1711_s4, %s1711_s4 }
  0x10   :  { %p1982_p0 = scmp.ne.s32.totalorder %s1711_s4, %s1981_s5  ;;  %p1987_p2 = scmp.lt.s32.totalorder %s1981_s5, %s1981_s5 }
  0x12   :  { %p1988_p3 = por %p1987_p2, %p1986_p1 }
  0x14   :  { %p1989_p4 = pnand %p1988_p3, %p1982_p0 }
  0xcc   :  { %v1817_v20 = vpop.f32.mrf.mxu0 }
  0xcd   :  { %v2096_v21 = vadd.f32 %v1817_v20, %v37_v19 }
  0xce   :  { %v2098_v22 = vpop.f32.mrf.mxu1  ;;  %v111_v23 = vpop.f32.mrf.mxu0 }
  0xcf   :  { %v112_v25 = vadd.f32 %v111_v23, %v37_v19  ;;  %v32_v23 = vld [vmem:[%s2276_s2 + $0x68] sm:$0xff] }
  0xd0   :  { %v2100_v24 = vpop.f32.mrf.mxu1 }
  0xd1   :  { %533 = vrot.lane.b32.xlu1 %v2100_v24, %s2005_s13  ;;  %368 = vrot.lane.b32.xlu0 %v2100_v24, %s2006_s14 }
  0xd2   :  { %1834 = vmatpush3.xpose.msk.msra.mxu0 %vm202_vm3, %v2100_v24 }
  0xd3   :  { %1838 = vmatprep.subr.mxu0 %v2003_v14 }
  0xd5   :  { %1836 = vmatmul.mubr.msk.f32.vlgmr.msra.gmra.mxu0 %vm202_vm3, %v112_v25  ;;  %531 = vrot.lane.b32.xlu1 %v112_v25, %s2005_s13 }
  0xd6   :  { %366 = vrot.lane.b32.xlu0 %v112_v25, %s2006_s14  ;;  %1840 = vmatprep.mubr.msk.f32.mxu0 %vm2004_vm2, %v2003_v14 }
  0xd9   :  { %696 = vrot.lane.b32.xlu1 %v112_v25, %s2007_s15  ;;  %v30_v25 = vld [vmem:[%s2276_s2 + $0x58] sm:$0xff] }
  0xda   :  { %698 = vrot.lane.b32.xlu0 %v2100_v24, %s2007_s15 }
 0x143   :  { %v369_v26 = vpop.permute.xlu0 %368  ;;  %v534_v27 = vpop.permute.xlu1 %533 }
 0x144   :  { %1844 = vmatpush3.xpose.msk.msra.mxu1 %vm202_vm3, %v369_v26  ;;  %v29_v26 = vld [vmem:[%s2276_s2 + $0x50] sm:$0xff] }
 0x145   :  { %1853 = vmatprep.subr.mxu1 %v2003_v14 }
 0x147   :  { %v532_v29 = vpop.permute.xlu1 %531 }
 0x148   :  { %v367_v28 = vpop.permute.xlu0 %366 }
 0x149   :  { %1846 = vmatmul.mubr.msk.f32.vlgmr.msra.gmra.mxu1 %vm202_vm3, %v367_v28 }
 0x14a   :  { %1854 = vmatpush3.xpose.msk.msra.mxu1 %vm202_vm3, %v534_v27  ;;  %1855 = vmatprep.mubr.msk.f32.mxu1 %vm2004_vm2, %v2003_v14 }
 0x14b   :  { %1863 = vmatprep.subr.mxu1 %v2003_v14  ;;  %v697_v31 = vpop.permute.xlu1 %696 }
 0x14c   :  { %v699_v30 = vpop.permute.xlu0 %698 }
 0x14d   :  { %1856 = vmatmul.mubr.msk.f32.vlgmr.msra.gmra.mxu1 %vm202_vm3, %v532_v29 }
 0x14e   :  { %1864 = vmatpush3.xpose.msk.msra.mxu1 %vm202_vm3, %v699_v30  ;;  %1865 = vmatprep.mubr.msk.f32.mxu1 %vm2004_vm2, %v2003_v14 }
 0x14f   :  { %1873 = vmatprep.subr.mxu1 %v2003_v14 }
 0x151   :  { %1866 = vmatmul.mubr.msk.f32.vlgmr.msra.gmra.mxu1 %vm202_vm3, %v697_v31 }
 0x152   :  { %1881 = vmatprep.mubr.msk.f32.mxu1 %vm2004_vm2, %v2003_v14  ;;  %1874 = vmatpush3.msra.mxu1 %v32_v23 }
 0x153   :  { %1875 = vmatprep.subr.mxu1 %v2003_v14 }
 0x195   :  { %v275_v32 = vpop.f32.mrf.mxu0 }
 0x196   :  { %v279_v33 = vsel %vm202_vm3, %v275_v32, -inf }
 0x197   :  { %280 = vmax.xlane.f32.xlu0 %v279_v33  ;;  %v1837_v34 = vpop.f32.mrf.mxu0 }
 0x209   :  { %v440_v35 = vpop.f32.mrf.mxu1 }
 0x20a   :  { %v444_v36 = vsel %vm202_vm3, %v440_v35, -inf }
 0x20b   :  { %445 = vmax.xlane.f32.xlu1 %v444_v36  ;;  %v1847_v37 = vpop.f32.mrf.mxu1 }
 0x20d   :  { %v605_v38 = vpop.f32.mrf.mxu1 }
 0x20e   :  { %v609_v39 = vsel %vm202_vm3, %v605_v38, -inf }
 0x20f   :  { %v1857_v40 = vpop.f32.mrf.mxu1  ;;  %610 = vmax.xlane.f32.xlu0 %v609_v39 }
 0x211   :  { %v770_v41 = vpop.f32.mrf.mxu1 }
 0x212   :  { %v774_v42 = vsel %vm202_vm3, %v770_v41, -inf }
 0x213   :  { %v1867_v43 = vpop.f32.mrf.mxu1  ;;  %775 = vmax.xlane.f32.xlu0 %v774_v42 }
 0x21c   :  { %290 = vrot.lane.b32.xlu1 %v2100_v24, %s2008_s16 }
 0x220   :  { %v281_v44 = vpop.xlane.xlu0 %280 }
 0x221   :  { %v282_v45 = vsub.f32 %v275_v32, %v281_v44 }
 0x223   :  { %v283_v46 = vmul.f32 1.442695, %v282_v45 }
 0x225   :  { %1949 = vpow2.f32 %v283_v46 }
 0x232   :  { %v1950_v47 = vpop.eup %1949 }
 0x233   :  { %v285_v48 = vsel %vm202_vm3, %v1950_v47, 0.0 }
 0x240   :  { %286 = vadd.xlane.f32.xlu1 %v285_v48 }
 0x294   :  { %v446_v49 = vpop.xlane.xlu1 %445 }
 0x295   :  { %v447_v50 = vsub.f32 %v440_v35, %v446_v49 }
 0x297   :  { %v448_v51 = vmul.f32 1.442695, %v447_v50  ;;  %v953_v50 = vsub.s32 1, %v2087_v16 }
 0x298   :  { %v291_v52 = vpop.permute.xlu1 %290  ;;  %v611_v53 = vpop.xlane.xlu0 %610 }
 0x299   :  { %1951 = vpow2.f32 %v448_v51  ;;  %v612_v54 = vsub.f32 %v605_v38, %v611_v53  ;;  %1839 = vmatpush3.msra.mxu0 %v291_v52  ;;  %v2229_v51 = vrot.slane %v2093_v18, %v953_v50 }
 0x29a   :  { %1848 = vmatprep.subr.mxu0 %v2003_v14 }
 0x29b   :  { %v613_v55 = vmul.f32 1.442695, %v612_v54 }
 0x29c   :  { %v776_v56 = vpop.xlane.xlu0 %775 }
 0x29d   :  { %1953 = vpow2.f32 %v613_v55  ;;  %v777_v57 = vsub.f32 %v770_v41, %v776_v56 }
 0x29f   :  { %v778_v58 = vmul.f32 1.442695, %v777_v57 }
 0x2a1   :  { %1955 = vpow2.f32 %v778_v58 }
 0x2a6   :  { %v1952_v59 = vpop.eup %1951 }
 0x2a7   :  { %v450_v60 = vsel %vm202_vm3, %v1952_v59, 0.0 }
 0x2a8   :  { %451 = vadd.xlane.f32.xlu0 %v450_v60 }
 0x2aa   :  { %v1954_v61 = vpop.eup %1953 }
 0x2ab   :  { %v615_v62 = vsel %vm202_vm3, %v1954_v61, 0.0 }
 0x2ac   :  { %616 = vadd.xlane.f32.xlu1 %v615_v62 }
 0x2ae   :  { %v1956_v63 = vpop.eup %1955 }
 0x2af   :  { %v780_v0 = vsel %vm202_vm3, %v1956_v63, 0.0 }
 0x2b0   :  { %781 = vadd.xlane.f32.xlu0 %v780_v0 }
 0x2bd   :  { %620 = vrot.lane.b32.xlu1 %v2100_v24, %s2009_s17 }
 0x2c1   :  { %785 = vrot.lane.b32.xlu1 %v2100_v24, %s2010_s18 }
 0x2c6   :  { %455 = vrot.lane.b32.xlu0 %v2100_v24, %s2011_s19  ;;  %v31_v24 = vld [vmem:[%s2276_s2 + $0x60] sm:$0xff]  ;;  %s2014_s2 = smov 24  }
 0x2c7   :  { %1876 = vmatpush3.msra.mxu1 %v31_v24 }
 0x2c8   :  { %1877 = vmatprep.subr.mxu1 %v2003_v14 }
 0x2c9   :  { %v287_v1 = vpop.xlane.xlu1 %286  ;;  %1878 = vmatpush3.msra.mxu1 %v30_v25 }
 0x2ca   :  { %1957 = vrcp.f32 %v287_v1  ;;  %1879 = vmatprep.subr.mxu1 %v2003_v14 }
 0x2cb   :  { %1880 = vmatpush3.msra.mxu1 %v29_v26 }
 0x2cc   :  { %1894 = vmatprep.subr.mxu1 %v2003_v14 }
 0x2d7   :  { %v1958_v2 = vpop.eup %1957 }
 0x2d8   :  { %v289_v3 = vmul.f32 %v1958_v2, %v1950_v47 }
 0x2da   :  { %1841 = vmatmul.mubr.msk.f32.vlgmr.msra.gmra.mxu0 %vm202_vm3, %v289_v3 }
 0x2db   :  { %1850 = vmatprep.mubr.msk.f32.mxu0 %vm2004_vm2, %v2003_v14 }
 0x331   :  { %v452_v4 = vpop.xlane.xlu0 %451 }
 0x332   :  { %1959 = vrcp.f32 %v452_v4 }
 0x335   :  { %v617_v5 = vpop.xlane.xlu1 %616 }
 0x336   :  { %1961 = vrcp.f32 %v617_v5 }
 0x339   :  { %v782_v6 = vpop.xlane.xlu0 %781  ;;  %v621_v9 = vpop.permute.xlu1 %620 }
 0x33a   :  { %1963 = vrcp.f32 %v782_v6 }
 0x33d   :  { %v456_v7 = vpop.permute.xlu0 %455  ;;  %v786_v13 = vpop.permute.xlu1 %785 }
 0x33e   :  { %1849 = vmatpush3.msra.mxu0 %v456_v7 }
 0x33f   :  { %v1960_v8 = vpop.eup %1959  ;;  %1858 = vmatprep.subr.mxu0 %v2003_v14 }
 0x340   :  { %v454_v10 = vmul.f32 %v1960_v8, %v1952_v59 }
 0x342   :  { %1851 = vmatmul.mubr.msk.f32.vlgmr.msra.gmra.mxu0 %vm202_vm3, %v454_v10 }
 0x343   :  { %v1962_v11 = vpop.eup %1961  ;;  %1859 = vmatpush3.msra.mxu0 %v621_v9  ;;  %1860 = vmatprep.mubr.msk.f32.mxu0 %vm2004_vm2, %v2003_v14 }
 0x344   :  { %1868 = vmatprep.subr.mxu0 %v2003_v14  ;;  %v619_v12 = vmul.f32 %v1962_v11, %v1954_v61 }
 0x346   :  { %1861 = vmatmul.mubr.msk.f32.vlgmr.msra.gmra.mxu0 %vm202_vm3, %v619_v12 }
 0x347   :  { %v1964_v15 = vpop.eup %1963  ;;  %1869 = vmatpush3.msra.mxu0 %v786_v13  ;;  %1870 = vmatprep.mubr.msk.f32.mxu0 %vm2004_vm2, %v2003_v14 }
 0x348   :  { %1884 = vmatprep.subr.mxu0 %v2003_v14  ;;  %v784_v17 = vmul.f32 %v1964_v15, %v1956_v63 }
 0x34a   :  { %1871 = vmatmul.mubr.msk.f32.vlgmr.msra.gmra.mxu0 %vm202_vm3, %v784_v17 }
 0x34b   :  { %1885 = vmatpush3.xpose.msk.msra.mxu0 %vm202_vm3, %v2098_v22  ;;  %1886 = vmatprep.mubr.msk.f32.mxu0 %vm2004_vm2, %v2003_v14 }
 0x34c   :  { %1889 = vmatprep.subr.mxu0 %v2003_v14 }
 0x34e   :  { %1887 = vmatmul.mubr.msk.f32.vlgmr.msra.gmra.mxu0 %vm202_vm3, %v2096_v21 }
 0x34f   :  { %1891 = vmatprep.mubr.msk.f32.mxu0 %vm2004_vm2, %v2003_v14 }
 0x39a   :  { %v362_v19 = vpop.f32.mrf.mxu0 }
 0x39c   :  { %v1842_v20 = vpop.f32.mrf.mxu0 }
 0x402   :  { %v527_v27 = vpop.f32.mrf.mxu0 }
 0x403   :  { %862 = vrot.lane.b32.xlu0 %v527_v27, %s2012_s28 }
 0x404   :  { %v1852_v28 = vpop.f32.mrf.mxu0 }
 0x406   :  { %v692_v29 = vpop.f32.mrf.mxu0 }
 0x407   :  { %866 = vrot.lane.b32.xlu1 %v692_v29, %s2013_s29 }
 0x408   :  { %v1862_v30 = vpop.f32.mrf.mxu0 }
 0x40a   :  { %v857_v31 = vpop.f32.mrf.mxu0 }
 0x40b   :  { %1122 = vrot.lane.b32.xlu1 %v2098_v22, %s2006_s14  ;;  %870 = vrot.lane.b32.xlu0 %v857_v31, %s2014_s2 }
 0x40c   :  { %v1872_v32 = vpop.f32.mrf.mxu0 }
 0x40e   :  { %v1029_v33 = vpop.f32.mrf.mxu0 }
 0x40f   :  { %1287 = vrot.lane.b32.xlu1 %v2098_v22, %s2005_s13  ;;  %1120 = vrot.lane.b32.xlu0 %v2096_v21, %s2006_s14  ;;  %v1033_v35 = vsel %vm202_vm3, %v1029_v33, -inf }
 0x410   :  { %v1888_v34 = vpop.f32.mrf.mxu0 }
 0x413   :  { %1452 = vrot.lane.b32.xlu1 %v2098_v22, %s2007_s15  ;;  %1285 = vrot.lane.b32.xlu0 %v2096_v21, %s2005_s13 }
 0x417   :  { %1450 = vrot.lane.b32.xlu0 %v2096_v21, %s2007_s15 }
 0x437   :  { %1034 = vmax.xlane.f32.xlu1 %v1033_v35 }
 0x475   :  { %v863_v36 = vpop.permute.xlu0 %862 }
 0x476   :  { %v873_v38 = vsel %vm202_vm3, %v362_v19, %v863_v36 }
 0x479   :  { %v867_v37 = vpop.permute.xlu1 %866 }
 0x47a   :  { %v875_v39 = vsel %vm874_vm4, %v873_v38, %v867_v37 }
 0x47d   :  { %v1123_v40 = vpop.permute.xlu1 %1122  ;;  %v871_v41 = vpop.permute.xlu0 %870 }
 0x47e   :  { %v877_v42 = vsel %vm876_vm5, %v875_v39, %v871_v41 }
 0x47f   :  { %1882 = vmatmul.mubr.msk.f32.vlgmr.msra.gmra.mxu1 %vm38_vm0, %v877_v42 }
 0x480   :  { %1895 = vmatpush3.xpose.msk.msra.mxu1 %vm202_vm3, %v1123_v40  ;;  %1896 = vmatprep.mubr.msk.f32.mxu1 %vm2004_vm2, %v2003_v14 }
 0x481   :  { %v1288_v21 = vpop.permute.xlu1 %1287  ;;  %v1121_v43 = vpop.permute.xlu0 %1120  ;;  %1904 = vmatprep.subr.mxu1 %v2003_v14 }
 0x483   :  { %1897 = vmatmul.mubr.msk.f32.vlgmr.msra.gmra.mxu1 %vm202_vm3, %v1121_v43 }
 0x484   :  { %1905 = vmatpush3.xpose.msk.msra.mxu1 %vm202_vm3, %v1288_v21  ;;  %1906 = vmatprep.mubr.msk.f32.mxu1 %vm2004_vm2, %v2003_v14 }
 0x485   :  { %v1453_v44 = vpop.permute.xlu1 %1452  ;;  %v1286_v45 = vpop.permute.xlu0 %1285  ;;  %1914 = vmatprep.subr.mxu1 %v2003_v14 }
 0x487   :  { %1907 = vmatmul.mubr.msk.f32.vlgmr.msra.gmra.mxu1 %vm202_vm3, %v1286_v45 }
 0x488   :  { %1915 = vmatpush3.xpose.msk.msra.mxu1 %vm202_vm3, %v1453_v44  ;;  %1916 = vmatprep.mubr.msk.f32.mxu1 %vm2004_vm2, %v2003_v14 }
 0x489   :  { %v1451_v46 = vpop.permute.xlu0 %1450  ;;  %1924 = vmatprep.subr.mxu1 %v2003_v14 }
 0x48b   :  { %1917 = vmatmul.mubr.msk.f32.vlgmr.msra.gmra.mxu1 %vm202_vm3, %v1451_v46 }
 0x48c   :  { %1925 = vmatpush3.msra.mxu1 %v32_v23  ;;  %1932 = vmatprep.mubr.msk.f32.mxu1 %vm2004_vm2, %v2003_v14 }
 0x48d   :  { %1926 = vmatprep.subr.mxu1 %v2003_v14 }
 0x48e   :  { %1927 = vmatpush3.msra.mxu1 %v31_v24 }
 0x48f   :  { %1928 = vmatprep.subr.mxu1 %v2003_v14 }
 0x490   :  { %1929 = vmatpush3.msra.mxu1 %v30_v25 }
 0x491   :  { %1930 = vmatprep.subr.mxu1 %v2003_v14 }
 0x492   :  { %1931 = vmatpush3.msra.mxu1 %v29_v26 }
 0x4c0   :  { %v1035_v47 = vpop.xlane.xlu1 %1034 }
 0x4c1   :  { %v1036_v48 = vsub.f32 %v1029_v33, %v1035_v47 }
 0x4c3   :  { %v1037_v49 = vmul.f32 1.442695, %v1036_v48 }
 0x4c5   :  { %1965 = vpow2.f32 %v1037_v49 }
 0x4d2   :  { %v1966_v60 = vpop.eup %1965 }
 0x4d3   :  { %v1039_v62 = vsel %vm202_vm3, %v1966_v60, 0.0 }
 0x53f   :  { %v947_v52 = vpop.f32.mrf.mxu1 }
 0x540   :  { %v955_v53 = vadd.f32 %v2229_v51, %v947_v52 }
 0x541   :  { %v1883_v54 = vpop.f32.mrf.mxu1 }
 0x542   :  { %956 = vst.msk [vmem:[#allocation2] sm:$0xff] %vm38_vm0, %v955_v53 }
 0x543   :  { %v1194_v55 = vpop.f32.mrf.mxu1 }
 0x544   :  { %v1198_v56 = vsel %vm202_vm3, %v1194_v55, -inf }
 0x545   :  { %1199 = vmax.xlane.f32.xlu0 %v1198_v56  ;;  %v1898_v57 = vpop.f32.mrf.mxu1 }
 0x547   :  { %v1359_v58 = vpop.f32.mrf.mxu1 }
 0x548   :  { %v1363_v59 = vsel %vm202_vm3, %v1359_v58, -inf }
 0x549   :  { %1364 = vmax.xlane.f32.xlu0 %v1363_v59  ;;  %v1908_v16 = vpop.f32.mrf.mxu1 }
 0x54b   :  { %v1524_v61 = vpop.f32.mrf.mxu1 }
 0x54c   :  { %v1528_v18 = vsel %vm202_vm3, %v1524_v61, -inf }
 0x54d   :  { %v1918_v63 = vpop.f32.mrf.mxu1  ;;  %1529 = vmax.xlane.f32.xlu1 %v1528_v18  ;;  %1040 = vadd.xlane.f32.xlu0 %v1039_v62 }
 0x55e   :  { %1209 = vrot.lane.b32.xlu1 %v2098_v22, %s2011_s19 }
 0x563   :  { %1044 = vrot.lane.b32.xlu0 %v2098_v22, %s2008_s16 }
 0x5ce   :  { %v1200_v0 = vpop.xlane.xlu0 %1199 }
 0x5cf   :  { %v1201_v1 = vsub.f32 %v1194_v55, %v1200_v0 }
 0x5d1   :  { %v1202_v2 = vmul.f32 1.442695, %v1201_v1 }
 0x5d2   :  { %v1365_v3 = vpop.xlane.xlu0 %1364 }
 0x5d3   :  { %1967 = vpow2.f32 %v1202_v2  ;;  %v1366_v4 = vsub.f32 %v1359_v58, %v1365_v3 }
 0x5d5   :  { %v1367_v5 = vmul.f32 1.442695, %v1366_v4 }
 0x5d6   :  { %v1041_v6 = vpop.xlane.xlu0 %1040  ;;  %v1530_v7 = vpop.xlane.xlu1 %1529 }
 0x5d7   :  { %1969 = vpow2.f32 %v1367_v5  ;;  %v1531_v8 = vsub.f32 %v1524_v61, %v1530_v7 }
 0x5d8   :  { %1971 = vrcp.f32 %v1041_v6 }
 0x5d9   :  { %v1532_v9 = vmul.f32 1.442695, %v1531_v8 }
 0x5da   :  { %v1045_v10 = vpop.permute.xlu0 %1044  ;;  %v1210_v23 = vpop.permute.xlu1 %1209 }
 0x5db   :  { %1973 = vpow2.f32 %v1532_v9  ;;  %1890 = vmatpush3.msra.mxu0 %v1045_v10 }
 0x5dc   :  { %1899 = vmatprep.subr.mxu0 %v2003_v14 }
 0x5e0   :  { %v1968_v11 = vpop.eup %1967 }
 0x5e1   :  { %v1204_v12 = vsel %vm202_vm3, %v1968_v11, 0.0 }
 0x5e2   :  { %1205 = vadd.xlane.f32.xlu1 %v1204_v12 }
 0x5e4   :  { %v1970_v13 = vpop.eup %1969 }
 0x5e5   :  { %v1972_v15 = vpop.eup %1971  ;;  %v1369_v17 = vsel %vm202_vm3, %v1970_v13, 0.0 }
 0x5e6   :  { %1370 = vadd.xlane.f32.xlu0 %v1369_v17  ;;  %v1043_v19 = vmul.f32 %v1972_v15, %v1966_v60 }
 0x5e8   :  { %v1974_v20 = vpop.eup %1973  ;;  %1892 = vmatmul.mubr.msk.f32.vlgmr.msra.gmra.mxu0 %vm202_vm3, %v1043_v19 }
 0x5e9   :  { %1900 = vmatpush3.msra.mxu0 %v1210_v23  ;;  %v1534_v24 = vsel %vm202_vm3, %v1974_v20, 0.0  ;;  %1901 = vmatprep.mubr.msk.f32.mxu0 %vm2004_vm2, %v2003_v14 }
 0x5ea   :  { %1535 = vadd.xlane.f32.xlu1 %v1534_v24  ;;  %1909 = vmatprep.subr.mxu0 %v2003_v14 }
 0x5fb   :  { %1374 = vrot.lane.b32.xlu1 %v2098_v22, %s2009_s17 }
 0x5fc   :  { %1539 = vrot.lane.b32.xlu0 %v2098_v22, %s2010_s18 }
 0x66b   :  { %v1206_v25 = vpop.xlane.xlu1 %1205 }
 0x66c   :  { %1975 = vrcp.f32 %v1206_v25 }
 0x66f   :  { %v1371_v26 = vpop.xlane.xlu0 %1370 }
 0x670   :  { %1977 = vrcp.f32 %v1371_v26 }
 0x673   :  { %v1536_v27 = vpop.xlane.xlu1 %1535  ;;  %v1540_v22 = vpop.permute.xlu0 %1539 }
 0x674   :  { %1979 = vrcp.f32 %v1536_v27 }
 0x677   :  { %v1375_v30 = vpop.permute.xlu1 %1374 }
 0x679   :  { %v1976_v28 = vpop.eup %1975 }
 0x67a   :  { %v1208_v29 = vmul.f32 %v1976_v28, %v1968_v11 }
 0x67c   :  { %1902 = vmatmul.mubr.msk.f32.vlgmr.msra.gmra.mxu0 %vm202_vm3, %v1208_v29 }
 0x67d   :  { %v1978_v31 = vpop.eup %1977  ;;  %1910 = vmatpush3.msra.mxu0 %v1375_v30  ;;  %1911 = vmatprep.mubr.msk.f32.mxu0 %vm2004_vm2, %v2003_v14 }
 0x67e   :  { %1919 = vmatprep.subr.mxu0 %v2003_v14  ;;  %v1373_v32 = vmul.f32 %v1978_v31, %v1970_v13 }
 0x680   :  { %1912 = vmatmul.mubr.msk.f32.vlgmr.msra.gmra.mxu0 %vm202_vm3, %v1373_v32 }
 0x681   :  { %v1980_v33 = vpop.eup %1979  ;;  %1920 = vmatpush3.msra.mxu0 %v1540_v22  ;;  %1921 = vmatprep.mubr.msk.f32.mxu0 %vm2004_vm2, %v2003_v14 }
 0x682   :  { %v1538_v34 = vmul.f32 %v1980_v33, %v1974_v20 }
 0x684   :  { %1922 = vmatmul.mubr.msk.f32.vlgmr.msra.gmra.mxu0 %vm202_vm3, %v1538_v34 }
 0x6a8   :  { %v1116_v35 = vpop.f32.mrf.mxu0 }
 0x6aa   :  { %v1893_v36 = vpop.f32.mrf.mxu0 }
 0x73c   :  { %v1281_v37 = vpop.f32.mrf.mxu0 }
 0x73d   :  { %1616 = vrot.lane.b32.xlu1 %v1281_v37, %s2012_s28 }
 0x73e   :  { %v1903_v38 = vpop.f32.mrf.mxu0 }
 0x740   :  { %v1446_v39 = vpop.f32.mrf.mxu0 }
 0x741   :  { %1620 = vrot.lane.b32.xlu0 %v1446_v39, %s2013_s29 }
 0x742   :  { %v1913_v40 = vpop.f32.mrf.mxu0 }
 0x744   :  { %v1611_v41 = vpop.f32.mrf.mxu0 }
 0x745   :  { %1624 = vrot.lane.b32.xlu1 %v1611_v41, %s2014_s2 }
 0x746   :  { %v1923_v42 = vpop.f32.mrf.mxu0 }
 0x7af   :  { %v1617_v21 = vpop.permute.xlu1 %1616 }
 0x7b0   :  { %v1627_v14 = vsel %vm202_vm3, %v1116_v35, %v1617_v21 }
 0x7b3   :  { %v1621_v43 = vpop.permute.xlu0 %1620 }
 0x7b4   :  { %v1628_v44 = vsel %vm874_vm4, %v1627_v14, %v1621_v43 }
 0x7b7   :  { %v1625_v45 = vpop.permute.xlu1 %1624 }
 0x7b8   :  { %v1629_v46 = vsel %vm876_vm5, %v1628_v44, %v1625_v45 }
 0x7b9   :  { %1933 = vmatmul.mubr.msk.f32.vlgmr.msra.gmra.mxu1 %vm38_vm0, %v1629_v46 }
 0x879   :  { %v1699_v47 = vpop.f32.mrf.mxu1 }
 0x87a   :  { %v1703_v48 = vadd.f32 %v1699_v47, %v2229_v51 }
 0x87b   :  { %v1934_v49 = vpop.f32.mrf.mxu1 }
 0x87c   :  { %1704 = vst.msk [vmem:[#allocation2 + $0x8] sm:$0xff] %vm38_vm0, %v1703_v48 }
 0x87d   :  { %1992 = shalt.err (!%p1989_p4)
}
 0x87e   :  { %s2016_s6 = smov 128  }
 0x87f   :  { %1716 = dma.vmem_to_hbm [thread:$0]  %s1711_s4, 256, %s2277_s3, [#allocation3], %s2016_s6, %s2016_s6, %s2012_s28  }
 0x880   :  { %2001 = dma.done.wait [#allocation3], 256  }
 0x881   :  { %2002 = vsyncadd [#allocation3], 4294967040 }
 0x882   :  { %1720 = vsyncpa [#allocation3], 1 }

</bundles_post_ra>
